<compile_context>
chip_gen: v6e
topology: v6e:2x2x1
jax: 0.10.0
libtpu: 0.0.40
codegen_flags: <defaults>
</compile_context>

<pallas_src>
import functools

import jax
import jax.numpy as jnp
from jax import lax
from jax.experimental import pallas as pl
from jax.experimental.pallas import tpu as pltpu

KS = 3  # depthwise kernel size


def _round_up(v, m):
    return (v + m - 1) // m * m


def _vmem_capacity_bytes():
    """Best-effort per-core VMEM query with a safe (v7x-sized) fallback."""
    try:
        info = pltpu.get_tpu_info()
        for name in ("vmem_capacity_bytes", "vmem_size_bytes", "vmem_bytes"):
            cap = getattr(info, name, None)
            if cap:
                return int(cap)
    except Exception:
        pass
    return 64 * 1024 * 1024


def _pick_chunk(hidden, hwp, budget):
    """Channel-chunk size Ck: multiple of 8, per-chunk slab (2*Ck, HWp) kept
    modest, minimal hidden-channel padding, then as large as possible."""
    slab_budget = max(64 << 10, min(2 << 20, budget // 8))
    ck_cap = max(8, min(128, (slab_budget // (2 * hwp * 4)) // 8 * 8))
    best_ck, best_pad = 8, (-hidden) % 8
    for ck in range(8, ck_cap + 1, 8):
        pad = (-hidden) % ck
        if pad < best_pad or (pad == best_pad and ck > best_ck):
            best_ck, best_pad = ck, pad
    return best_ck


def _ffn_kernel(x_ref, mask_ref, w_in_ref, b_in_ref, w_dw_ref, b_dw_ref,
                w_out_ref, b_out_ref, out_ref, *, W, bt, ck, hwp):
    """Grid step (b, c): `bt` images x one paired hidden-channel chunk."""
    c = pl.program_id(1)

    # init the resident output block with the project_out bias on the first
    # channel chunk; later chunks accumulate into it.
    @pl.when(c == 0)
    def _():
        bias_full = jnp.broadcast_to(b_out_ref[...], (out_ref.shape[1], hwp))
        for i in range(bt):
            out_ref[i] = bias_full

    w_in = w_in_ref[0]        # (2Ck, dim)
    b_in = b_in_ref[0]        # (2Ck, 1)
    w_dw = w_dw_ref[0]        # (2Ck, 9)
    b_dw = b_dw_ref[0]        # (2Ck, 1)
    w_out = w_out_ref[0]      # (dim, Ck)

    z_init = jnp.broadcast_to(b_dw, (2 * ck, hwp))   # hoisted out of the loops

    for i in range(bt):
        x_i = x_ref[i]                                       # (dim, HWp)
        # project_in for this chunk (MXU)
        y = jnp.dot(w_in, x_i, preferred_element_type=jnp.float32) + b_in
        # depthwise 3x3 conv (pad=1): 9 roll + precomputed-mask + FMA taps
        z = z_init
        for k in range(KS * KS):
            di = k // KS - 1
            dj = k % KS - 1
            off = di * W + dj
            shifted = y if off == 0 else pltpu.roll(y, shift=(-off) % hwp, axis=1)
            z = z + (shifted * mask_ref[k:k + 1, :]) * w_dw[:, k:k + 1]
        # gated activation (padded hidden rows are identically zero)
        g = jnp.maximum(z[:ck], 0.0) * z[ck:]
        # project_out contribution of this chunk (MXU), accumulate in-place
        out_ref[i] += jnp.dot(w_out, g, preferred_element_type=jnp.float32)


@jax.jit
def feed_forward(x, w_in, b_in, w_dw, b_dw, w_out, b_out):
    """Gated-dconv FFN.

    x:     (B, dim, H, W) f32, NCHW.
    w_in:  (2*hidden, dim, 1, 1)   b_in:  (2*hidden,)
    w_dw:  (2*hidden, 1, 3, 3)     b_dw:  (2*hidden,)
    w_out: (dim, hidden, 1, 1)     b_out: (dim,)
    (pass zero biases for the bias=False variant)
    """
    B, dim, H, W = x.shape
    hidden = w_out.shape[1]
    C2 = 2 * hidden
    HW = H * W
    HWp = _round_up(HW, 128)            # lane-dense (multiple-of-128) stores

    # VMEM-derived sizing (conservatively capped at 64 MiB for v7x per-TC)
    vmem_cap = min(_vmem_capacity_bytes(), 64 << 20)
    budget = vmem_cap // 4
    vmem_limit = vmem_cap * 3 // 4

    Ck = _pick_chunk(hidden, HWp, budget)
    hp = _round_up(hidden, Ck)
    n_chunks = hp // Ck

    # ---- weight prep (host side, tiny): chunk-paired layouts ----------------
    w_in2 = w_in.reshape(C2, dim)
    w_dw2 = w_dw.reshape(C2, KS * KS)
    w_out2 = w_out.reshape(dim, hidden)

    def pad_half_rows(a):               # (hidden, X) -> (hp, X), zero pad
        return jnp.pad(a, ((0, hp - hidden),) + ((0, 0),) * (a.ndim - 1))

    def chunk_pair(a):                  # (2*hidden, X) -> (n_chunks, 2*Ck, X)
        h1 = pad_half_rows(a[:hidden]).reshape(n_chunks, Ck, -1)
        h2 = pad_half_rows(a[hidden:]).reshape(n_chunks, Ck, -1)
        return jnp.concatenate([h1, h2], axis=1)

    w_in_c = chunk_pair(w_in2)                          # (nc, 2Ck, dim)
    b_in_c = chunk_pair(b_in.reshape(C2, 1))            # (nc, 2Ck, 1)
    w_dw_c = chunk_pair(w_dw2)                          # (nc, 2Ck, 9)
    b_dw_c = chunk_pair(b_dw.reshape(C2, 1))            # (nc, 2Ck, 1)
    w_out_c = (jnp.pad(w_out2, ((0, 0), (0, hp - hidden)))
               .reshape(dim, n_chunks, Ck).transpose(1, 0, 2))  # (nc, dim, Ck)
    b_out_c = b_out.reshape(dim, 1)

    # ---- precomputed dwconv tap validity masks ------------------------------
    pos = jnp.arange(HWp, dtype=jnp.int32)
    row, col = pos // W, pos % W
    in_img = pos < HW
    masks = []
    for di in (-1, 0, 1):
        for dj in (-1, 0, 1):
            masks.append(in_img & (row + di >= 0) & (row + di < H)
                         & (col + dj >= 0) & (col + dj < W))
    mask = jnp.stack(masks).astype(jnp.float32)          # (9, HWp)

    # ---- batch tiling: sized from VMEM, >=2 parallel steps when B allows ----
    fixed = 4 * (2 * Ck) * HWp * 4 + 9 * HWp * 4          # chunk temporaries + mask
    per_image = 2 * 2 * dim * HWp * 4                     # x + out, double-buffered
    mem_bt = max(1, int((budget - fixed) // per_image)) if budget > fixed else 1
    cap = B if B == 1 else max(1, B // 2)                 # keep both v7x TCs busy
    bt = 1
    for cand in range(max(1, min(B, cap, mem_bt)), 0, -1):
        if B % cand == 0:
            bt = cand
            break
    nb = B // bt

    # no host-side packing transpose: (B, dim, H, W) -> (B, dim, HW) is free
    x3 = x.reshape(B, dim, HW)
    if HWp != HW:
        x3 = jnp.pad(x3, ((0, 0), (0, 0), (0, HWp - HW)))

    kernel = functools.partial(_ffn_kernel, W=W, bt=bt, ck=Ck, hwp=HWp)
    out3 = pl.pallas_call(
        kernel,
        out_shape=jax.ShapeDtypeStruct((B, dim, HWp), jnp.float32),
        grid=(nb, n_chunks),
        in_specs=[
            pl.BlockSpec((bt, dim, HWp), lambda b, c: (b, 0, 0)),       # x
            pl.BlockSpec((KS * KS, HWp), lambda b, c: (0, 0)),          # tap masks
            pl.BlockSpec((1, 2 * Ck, dim), lambda b, c: (c, 0, 0)),     # w_in chunk
            pl.BlockSpec((1, 2 * Ck, 1), lambda b, c: (c, 0, 0)),       # b_in chunk
            pl.BlockSpec((1, 2 * Ck, KS * KS), lambda b, c: (c, 0, 0)), # w_dw chunk
            pl.BlockSpec((1, 2 * Ck, 1), lambda b, c: (c, 0, 0)),       # b_dw chunk
            pl.BlockSpec((1, dim, Ck), lambda b, c: (c, 0, 0)),         # w_out chunk
            pl.BlockSpec((dim, 1), lambda b, c: (0, 0)),                # b_out
        ],
        out_specs=pl.BlockSpec((bt, dim, HWp), lambda b, c: (b, 0, 0)),
        compiler_params=pltpu.CompilerParams(
            dimension_semantics=("parallel", "arbitrary"),
            vmem_limit_bytes=int(vmem_limit)),
    )(x3, mask, w_in_c, b_in_c, w_dw_c, b_dw_c, w_out_c, b_out_c)

    if HWp != HW:
        out3 = out3[:, :, :HW]
    return out3.reshape(B, dim, H, W)


# ------------------------- pure-JAX reference (for checking) ----------------
def _reference_ffn(x, w_in, b_in, w_dw, b_dw, w_out, b_out):
    B, dim, H, W = x.shape
    hidden = w_out.shape[1]
    C2 = 2 * hidden
    y = jnp.einsum("oc,bchw->bohw", w_in.reshape(C2, dim), x,
                   precision=lax.Precision.HIGHEST) + b_in[None, :, None, None]
    z = lax.conv_general_dilated(
        y, w_dw, window_strides=(1, 1), padding=((1, 1), (1, 1)),
        dimension_numbers=("NCHW", "OIHW", "NCHW"),
        feature_group_count=C2,
        precision=lax.Precision.HIGHEST) + b_dw[None, :, None, None]
    x1, x2 = z[:, :hidden], z[:, hidden:]
    g = jnp.maximum(x1, 0.0) * x2
    out = jnp.einsum("oc,bchw->bohw", w_out.reshape(dim, hidden), g,
                     precision=lax.Precision.HIGHEST) + b_out[None, :, None, None]
    return out


if __name__ == "__main__":
    B, dim, H, W = 2, 4, 16, 16
    hidden = dim * 3
    C2 = 2 * hidden

    key = jax.random.PRNGKey(0)
    kx, k1, k2, k3, k4, k5, k6 = jax.random.split(key, 7)
    x = jax.random.normal(kx, (B, dim, H, W), jnp.float32)
    # parameters in PyTorch Conv2d layouts (bias=True path exercised)
    w_in = jax.random.normal(k1, (C2, dim, 1, 1), jnp.float32) / dim ** 0.5
    b_in = jax.random.normal(k2, (C2,), jnp.float32) * 0.1
    w_dw = jax.random.normal(k3, (C2, 1, KS, KS), jnp.float32) / 3.0
    b_dw = jax.random.normal(k4, (C2,), jnp.float32) * 0.1
    w_out = jax.random.normal(k5, (dim, hidden, 1, 1), jnp.float32) / hidden ** 0.5
    b_out = jax.random.normal(k6, (dim,), jnp.float32) * 0.1

    out = feed_forward(x, w_in, b_in, w_dw, b_dw, w_out, b_out)
    out = jax.block_until_ready(out)

    ref = _reference_ffn(x, w_in, b_in, w_dw, b_dw, w_out, b_out)
    err = float(jnp.max(jnp.abs(out - ref)))
    assert err < 1e-3, f"mismatch vs reference: {err}"
    print("KERNEL_OK")
</pallas_src>

<mosaic_0001>
module attributes {stable_mosaic.version = 11 : i64} {
  func.func @_ffn_kernel(%arg0: i32, %arg1: i32, %arg2: memref<1x4x256xf32, #tpu.memory_space<vmem>>, %arg3: memref<9x256xf32, #tpu.memory_space<vmem>>, %arg4: memref<1x32x4xf32, #tpu.memory_space<vmem>>, %arg5: memref<1x32x1xf32, #tpu.memory_space<vmem>>, %arg6: memref<1x32x9xf32, #tpu.memory_space<vmem>>, %arg7: memref<1x32x1xf32, #tpu.memory_space<vmem>>, %arg8: memref<1x4x16xf32, #tpu.memory_space<vmem>>, %arg9: memref<4x1xf32, #tpu.memory_space<vmem>>, %arg10: memref<1x4x256xf32, #tpu.memory_space<vmem>>) attributes {dimension_semantics = [#tpu.dimension_semantics<parallel>, #tpu.dimension_semantics<arbitrary>], iteration_bounds = array<i64: 2, 1>, scalar_prefetch = 0 : i64, scratch_operands = 0 : i64, tpu.core_type = #tpu.core_type<tc>, window_params = [{transform_indices = @transform_0, window_bounds = array<i64: 1, 4, 256>}, {pipeline_mode = #tpu.pipeline_mode<synchronous>, transform_indices = @transform_1, window_bounds = array<i64: 9, 256>}, {transform_indices = @transform_2, window_bounds = array<i64: 1, 32, 4>}, {transform_indices = @transform_3, window_bounds = array<i64: 1, 32, 1>}, {transform_indices = @transform_4, window_bounds = array<i64: 1, 32, 9>}, {transform_indices = @transform_5, window_bounds = array<i64: 1, 32, 1>}, {transform_indices = @transform_6, window_bounds = array<i64: 1, 4, 16>}, {pipeline_mode = #tpu.pipeline_mode<synchronous>, transform_indices = @transform_7, window_bounds = array<i64: 4, 1>}, {transform_indices = @transform_8, window_bounds = array<i64: 1, 4, 256>}]} {
    %c0_i32 = arith.constant 0 : i32
    %0 = arith.cmpi eq, %arg1, %c0_i32 : i32
    %1 = arith.extui %0 : i1 to i32
    %c0_i32_0 = arith.constant 0 : i32
    %2 = arith.cmpi ne, %1, %c0_i32_0 : i32
    scf.if %2 {
      %c0_36 = arith.constant 0 : index
      %c0_37 = arith.constant 0 : index
      %103 = vector.load %arg9[%c0_36, %c0_37] : memref<4x1xf32, #tpu.memory_space<vmem>>, vector<4x1xf32>
      %104 = vector.shape_cast %103 : vector<4x1xf32> to vector<4x1xf32>
      %105 = vector.broadcast %104 : vector<4x1xf32> to vector<4x256xf32>
      %c0_38 = arith.constant 0 : index
      %c0_39 = arith.constant 0 : index
      %c0_40 = arith.constant 0 : index
      %106 = vector.load %arg10[%c0_38, %c0_39, %c0_40] : memref<1x4x256xf32, #tpu.memory_space<vmem>>, vector<1x4x256xf32>
      %107 = vector.shape_cast %106 : vector<1x4x256xf32> to vector<4x256xf32>
      %108 = vector.shape_cast %105 : vector<4x256xf32> to vector<1x4x256xf32>
      tpu.vector_store %arg10[%c0_38, %c0_39, %c0_40], %108 {strides = array<i32>} : memref<1x4x256xf32, #tpu.memory_space<vmem>>, vector<1x4x256xf32>,
    } else {
    }
    %c0 = arith.constant 0 : index
    %c0_1 = arith.constant 0 : index
    %c0_2 = arith.constant 0 : index
    %3 = vector.load %arg4[%c0, %c0_1, %c0_2] : memref<1x32x4xf32, #tpu.memory_space<vmem>>, vector<1x32x4xf32>
    %4 = vector.shape_cast %3 : vector<1x32x4xf32> to vector<32x4xf32>
    %c0_3 = arith.constant 0 : index
    %c0_4 = arith.constant 0 : index
    %c0_5 = arith.constant 0 : index
    %5 = vector.load %arg5[%c0_3, %c0_4, %c0_5] : memref<1x32x1xf32, #tpu.memory_space<vmem>>, vector<1x32x1xf32>
    %6 = vector.shape_cast %5 : vector<1x32x1xf32> to vector<32x1xf32>
    %c0_6 = arith.constant 0 : index
    %c0_7 = arith.constant 0 : index
    %c0_8 = arith.constant 0 : index
    %7 = vector.load %arg6[%c0_6, %c0_7, %c0_8] : memref<1x32x9xf32, #tpu.memory_space<vmem>>, vector<1x32x9xf32>
    %8 = vector.shape_cast %7 : vector<1x32x9xf32> to vector<32x9xf32>
    %c0_9 = arith.constant 0 : index
    %c0_10 = arith.constant 0 : index
    %c0_11 = arith.constant 0 : index
    %9 = vector.load %arg7[%c0_9, %c0_10, %c0_11] : memref<1x32x1xf32, #tpu.memory_space<vmem>>, vector<1x32x1xf32>
    %10 = vector.shape_cast %9 : vector<1x32x1xf32> to vector<32x1xf32>
    %c0_12 = arith.constant 0 : index
    %c0_13 = arith.constant 0 : index
    %c0_14 = arith.constant 0 : index
    %11 = vector.load %arg8[%c0_12, %c0_13, %c0_14] : memref<1x4x16xf32, #tpu.memory_space<vmem>>, vector<1x4x16xf32>
    %12 = vector.shape_cast %11 : vector<1x4x16xf32> to vector<4x16xf32>
    %13 = vector.shape_cast %10 : vector<32x1xf32> to vector<32x1xf32>
    %14 = vector.broadcast %13 : vector<32x1xf32> to vector<32x256xf32>
    %c0_15 = arith.constant 0 : index
    %c0_16 = arith.constant 0 : index
    %c0_17 = arith.constant 0 : index
    %15 = vector.load %arg2[%c0_15, %c0_16, %c0_17] : memref<1x4x256xf32, #tpu.memory_space<vmem>>, vector<1x4x256xf32>
    %16 = vector.shape_cast %15 : vector<1x4x256xf32> to vector<4x256xf32>
    %cst = arith.constant dense<0.000000e+00> : vector<32x256xf32>
    %17 = tpu.matmul %4, %16, %cst {dimension_numbers = #tpu.dot_dimension_numbers<[1], [0], [0], [1], [0, 0, 1, 1], [], []>} : vector<32x4xf32>, vector<4x256xf32>, vector<32x256xf32> -> vector<32x256xf32>
    %18 = vector.broadcast %6 : vector<32x1xf32> to vector<32x256xf32>
    %19 = arith.addf %17, %18 : vector<32x256xf32>
    %c17_i32 = arith.constant 17 : i32
    %20 = tpu.dynamic_rotate %19 by %c17_i32 dim 1 : vector<32x256xf32>, i32 -> vector<32x256xf32>
    %c0_18 = arith.constant 0 : index
    %c0_19 = arith.constant 0 : index
    %21 = vector.load %arg3[%c0_18, %c0_19] : memref<9x256xf32, #tpu.memory_space<vmem>>, vector<1x256xf32>
    %22 = vector.broadcast %21 : vector<1x256xf32> to vector<32x256xf32>
    %23 = arith.mulf %20, %22 : vector<32x256xf32>
    %24 = vector.extract_strided_slice %8 {offsets = [0, 0], sizes = [32, 1], strides = [1, 1]} : vector<32x9xf32> to vector<32x1xf32>
    %25 = vector.broadcast %24 : vector<32x1xf32> to vector<32x256xf32>
    %26 = arith.mulf %23, %25 : vector<32x256xf32>
    %27 = arith.addf %14, %26 : vector<32x256xf32>
    %c16_i32 = arith.constant 16 : i32
    %28 = tpu.dynamic_rotate %19 by %c16_i32 dim 1 : vector<32x256xf32>, i32 -> vector<32x256xf32>
    %c1 = arith.constant 1 : index
    %c0_20 = arith.constant 0 : index
    %29 = vector.load %arg3[%c1, %c0_20] : memref<9x256xf32, #tpu.memory_space<vmem>>, vector<1x256xf32>
    %30 = vector.broadcast %29 : vector<1x256xf32> to vector<32x256xf32>
    %31 = arith.mulf %28, %30 : vector<32x256xf32>
    %32 = vector.extract_strided_slice %8 {offsets = [0, 1], sizes = [32, 1], strides = [1, 1]} : vector<32x9xf32> to vector<32x1xf32>
    %33 = vector.broadcast %32 : vector<32x1xf32> to vector<32x256xf32>
    %34 = arith.mulf %31, %33 : vector<32x256xf32>
    %35 = arith.addf %27, %34 : vector<32x256xf32>
    %c15_i32 = arith.constant 15 : i32
    %36 = tpu.dynamic_rotate %19 by %c15_i32 dim 1 : vector<32x256xf32>, i32 -> vector<32x256xf32>
    %c2 = arith.constant 2 : index
    %c0_21 = arith.constant 0 : index
    %37 = vector.load %arg3[%c2, %c0_21] : memref<9x256xf32, #tpu.memory_space<vmem>>, vector<1x256xf32>
    %38 = vector.broadcast %37 : vector<1x256xf32> to vector<32x256xf32>
    %39 = arith.mulf %36, %38 : vector<32x256xf32>
    %40 = vector.extract_strided_slice %8 {offsets = [0, 2], sizes = [32, 1], strides = [1, 1]} : vector<32x9xf32> to vector<32x1xf32>
    %41 = vector.broadcast %40 : vector<32x1xf32> to vector<32x256xf32>
    %42 = arith.mulf %39, %41 : vector<32x256xf32>
    %43 = arith.addf %35, %42 : vector<32x256xf32>
    %c1_i32 = arith.constant 1 : i32
    %44 = tpu.dynamic_rotate %19 by %c1_i32 dim 1 : vector<32x256xf32>, i32 -> vector<32x256xf32>
    %c3 = arith.constant 3 : index
    %c0_22 = arith.constant 0 : index
    %45 = vector.load %arg3[%c3, %c0_22] : memref<9x256xf32, #tpu.memory_space<vmem>>, vector<1x256xf32>
    %46 = vector.broadcast %45 : vector<1x256xf32> to vector<32x256xf32>
    %47 = arith.mulf %44, %46 : vector<32x256xf32>
    %48 = vector.extract_strided_slice %8 {offsets = [0, 3], sizes = [32, 1], strides = [1, 1]} : vector<32x9xf32> to vector<32x1xf32>
    %49 = vector.broadcast %48 : vector<32x1xf32> to vector<32x256xf32>
    %50 = arith.mulf %47, %49 : vector<32x256xf32>
    %51 = arith.addf %43, %50 : vector<32x256xf32>
    %c4 = arith.constant 4 : index
    %c0_23 = arith.constant 0 : index
    %52 = vector.load %arg3[%c4, %c0_23] : memref<9x256xf32, #tpu.memory_space<vmem>>, vector<1x256xf32>
    %53 = vector.broadcast %52 : vector<1x256xf32> to vector<32x256xf32>
    %54 = arith.mulf %19, %53 : vector<32x256xf32>
    %55 = vector.extract_strided_slice %8 {offsets = [0, 4], sizes = [32, 1], strides = [1, 1]} : vector<32x9xf32> to vector<32x1xf32>
    %56 = vector.broadcast %55 : vector<32x1xf32> to vector<32x256xf32>
    %57 = arith.mulf %54, %56 : vector<32x256xf32>
    %58 = arith.addf %51, %57 : vector<32x256xf32>
    %c255_i32 = arith.constant 255 : i32
    %59 = tpu.dynamic_rotate %19 by %c255_i32 dim 1 : vector<32x256xf32>, i32 -> vector<32x256xf32>
    %c5 = arith.constant 5 : index
    %c0_24 = arith.constant 0 : index
    %60 = vector.load %arg3[%c5, %c0_24] : memref<9x256xf32, #tpu.memory_space<vmem>>, vector<1x256xf32>
    %61 = vector.broadcast %60 : vector<1x256xf32> to vector<32x256xf32>
    %62 = arith.mulf %59, %61 : vector<32x256xf32>
    %63 = vector.extract_strided_slice %8 {offsets = [0, 5], sizes = [32, 1], strides = [1, 1]} : vector<32x9xf32> to vector<32x1xf32>
    %64 = vector.broadcast %63 : vector<32x1xf32> to vector<32x256xf32>
    %65 = arith.mulf %62, %64 : vector<32x256xf32>
    %66 = arith.addf %58, %65 : vector<32x256xf32>
    %c241_i32 = arith.constant 241 : i32
    %67 = tpu.dynamic_rotate %19 by %c241_i32 dim 1 : vector<32x256xf32>, i32 -> vector<32x256xf32>
    %c6 = arith.constant 6 : index
    %c0_25 = arith.constant 0 : index
    %68 = vector.load %arg3[%c6, %c0_25] : memref<9x256xf32, #tpu.memory_space<vmem>>, vector<1x256xf32>
    %69 = vector.broadcast %68 : vector<1x256xf32> to vector<32x256xf32>
    %70 = arith.mulf %67, %69 : vector<32x256xf32>
    %71 = vector.extract_strided_slice %8 {offsets = [0, 6], sizes = [32, 1], strides = [1, 1]} : vector<32x9xf32> to vector<32x1xf32>
    %72 = vector.broadcast %71 : vector<32x1xf32> to vector<32x256xf32>
    %73 = arith.mulf %70, %72 : vector<32x256xf32>
    %74 = arith.addf %66, %73 : vector<32x256xf32>
    %c240_i32 = arith.constant 240 : i32
    %75 = tpu.dynamic_rotate %19 by %c240_i32 dim 1 : vector<32x256xf32>, i32 -> vector<32x256xf32>
    %c7 = arith.constant 7 : index
    %c0_26 = arith.constant 0 : index
    %76 = vector.load %arg3[%c7, %c0_26] : memref<9x256xf32, #tpu.memory_space<vmem>>, vector<1x256xf32>
    %77 = vector.broadcast %76 : vector<1x256xf32> to vector<32x256xf32>
    %78 = arith.mulf %75, %77 : vector<32x256xf32>
    %79 = vector.extract_strided_slice %8 {offsets = [0, 7], sizes = [32, 1], strides = [1, 1]} : vector<32x9xf32> to vector<32x1xf32>
    %80 = vector.broadcast %79 : vector<32x1xf32> to vector<32x256xf32>
    %81 = arith.mulf %78, %80 : vector<32x256xf32>
    %82 = arith.addf %74, %81 : vector<32x256xf32>
    %c239_i32 = arith.constant 239 : i32
    %83 = tpu.dynamic_rotate %19 by %c239_i32 dim 1 : vector<32x256xf32>, i32 -> vector<32x256xf32>
    %c8 = arith.constant 8 : index
    %c0_27 = arith.constant 0 : index
    %84 = vector.load %arg3[%c8, %c0_27] : memref<9x256xf32, #tpu.memory_space<vmem>>, vector<1x256xf32>
    %85 = vector.broadcast %84 : vector<1x256xf32> to vector<32x256xf32>
    %86 = arith.mulf %83, %85 : vector<32x256xf32>
    %87 = vector.extract_strided_slice %8 {offsets = [0, 8], sizes = [32, 1], strides = [1, 1]} : vector<32x9xf32> to vector<32x1xf32>
    %88 = vector.broadcast %87 : vector<32x1xf32> to vector<32x256xf32>
    %89 = arith.mulf %86, %88 : vector<32x256xf32>
    %90 = arith.addf %82, %89 : vector<32x256xf32>
    %91 = vector.extract_strided_slice %90 {offsets = [0, 0], sizes = [16, 256], strides = [1, 1]} : vector<32x256xf32> to vector<16x256xf32>
    %cst_28 = arith.constant 0.000000e+00 : f32
    %92 = vector.broadcast %cst_28 : f32 to vector<16x256xf32>
    %93 = arith.maximumf %91, %92 : vector<16x256xf32>
    %94 = vector.extract_strided_slice %90 {offsets = [16, 0], sizes = [16, 256], strides = [1, 1]} : vector<32x256xf32> to vector<16x256xf32>
    %95 = arith.mulf %93, %94 : vector<16x256xf32>
    %c0_29 = arith.constant 0 : index
    %c0_30 = arith.constant 0 : index
    %c0_31 = arith.constant 0 : index
    %96 = vector.load %arg10[%c0_29, %c0_30, %c0_31] : memref<1x4x256xf32, #tpu.memory_space<vmem>>, vector<1x4x256xf32>
    %97 = vector.shape_cast %96 : vector<1x4x256xf32> to vector<4x256xf32>
    %cst_32 = arith.constant dense<0.000000e+00> : vector<4x256xf32>
    %98 = tpu.matmul %12, %95, %cst_32 {dimension_numbers = #tpu.dot_dimension_numbers<[1], [0], [0], [1], [0, 0, 1, 1], [], []>} : vector<4x16xf32>, vector<16x256xf32>, vector<4x256xf32> -> vector<4x256xf32>
    %99 = arith.addf %97, %98 : vector<4x256xf32>
    %c0_33 = arith.constant 0 : index
    %c0_34 = arith.constant 0 : index
    %c0_35 = arith.constant 0 : index
    %100 = vector.load %arg10[%c0_33, %c0_34, %c0_35] : memref<1x4x256xf32, #tpu.memory_space<vmem>>, vector<1x4x256xf32>
    %101 = vector.shape_cast %100 : vector<1x4x256xf32> to vector<4x256xf32>
    %102 = vector.shape_cast %99 : vector<4x256xf32> to vector<1x4x256xf32>
    tpu.vector_store %arg10[%c0_33, %c0_34, %c0_35], %102 {strides = array<i32>} : memref<1x4x256xf32, #tpu.memory_space<vmem>>, vector<1x4x256xf32>,
    return
  }
  func.func @transform_0(%arg0: i32, %arg1: i32) -> (i32, i32, i32) {
    %c0_i32 = arith.constant 0 : i32
    %c0_i32_0 = arith.constant 0 : i32
    %c0_i32_1 = arith.constant 0 : i32
    return %arg0, %c0_i32, %c0_i32_0 : i32, i32, i32
  }
  func.func @transform_1(%arg0: i32, %arg1: i32) -> (i32, i32) {
    %c0_i32 = arith.constant 0 : i32
    %c0_i32_0 = arith.constant 0 : i32
    %c0_i32_1 = arith.constant 0 : i32
    return %c0_i32, %c0_i32_0 : i32, i32
  }
  func.func @transform_2(%arg0: i32, %arg1: i32) -> (i32, i32, i32) {
    %c0_i32 = arith.constant 0 : i32
    %c0_i32_0 = arith.constant 0 : i32
    %c0_i32_1 = arith.constant 0 : i32
    return %arg1, %c0_i32, %c0_i32_0 : i32, i32, i32
  }
  func.func @transform_3(%arg0: i32, %arg1: i32) -> (i32, i32, i32) {
    %c0_i32 = arith.constant 0 : i32
    %c0_i32_0 = arith.constant 0 : i32
    %c0_i32_1 = arith.constant 0 : i32
    return %arg1, %c0_i32, %c0_i32_0 : i32, i32, i32
  }
  func.func @transform_4(%arg0: i32, %arg1: i32) -> (i32, i32, i32) {
    %c0_i32 = arith.constant 0 : i32
    %c0_i32_0 = arith.constant 0 : i32
    %c0_i32_1 = arith.constant 0 : i32
    return %arg1, %c0_i32, %c0_i32_0 : i32, i32, i32
  }
  func.func @transform_5(%arg0: i32, %arg1: i32) -> (i32, i32, i32) {
    %c0_i32 = arith.constant 0 : i32
    %c0_i32_0 = arith.constant 0 : i32
    %c0_i32_1 = arith.constant 0 : i32
    return %arg1, %c0_i32, %c0_i32_0 : i32, i32, i32
  }
  func.func @transform_6(%arg0: i32, %arg1: i32) -> (i32, i32, i32) {
    %c0_i32 = arith.constant 0 : i32
    %c0_i32_0 = arith.constant 0 : i32
    %c0_i32_1 = arith.constant 0 : i32
    return %arg1, %c0_i32, %c0_i32_0 : i32, i32, i32
  }
  func.func @transform_7(%arg0: i32, %arg1: i32) -> (i32, i32) {
    %c0_i32 = arith.constant 0 : i32
    %c0_i32_0 = arith.constant 0 : i32
    %c0_i32_1 = arith.constant 0 : i32
    return %c0_i32, %c0_i32_0 : i32, i32
  }
  func.func @transform_8(%arg0: i32, %arg1: i32) -> (i32, i32, i32) {
    %c0_i32 = arith.constant 0 : i32
    %c0_i32_0 = arith.constant 0 : i32
    %c0_i32_1 = arith.constant 0 : i32
    return %arg0, %c0_i32, %c0_i32_0 : i32, i32, i32
  }
}

</mosaic_0001>

<bundles_post_ra>
// kernel: feed_forward.1
= control target key start
LH: loop header
LB: loop body
LE: loop exit
PB: predicated region body
PF: predicated region fallthrough
CT: control target
= control target key end

     0   :  { %s1706_s27 = smov 0   ;;  %s1708_s28 = smov 0   ;;  %s2505_s0 = inlined_call_operand.vmem [shape: f32[2,4,256], index: 0, kind: input, shape index: {}]   ;;  %s2506_s1 = inlined_call_operand.vmem [shape: f32[9,256], index: 1, kind: input, shape index: {}]   ;;  %s2507_s2 = inlined_call_operand.vmem [shape: f32[1,32,4], index: 2, kind: input, shape index: {}]   ;;  %s2508_s3 = inlined_call_operand.vmem [shape: f32[1,32,1], index: 3, kind: input, shape index: {}]   ;;  %s2509_s4 = inlined_call_operand.vmem [shape: f32[1,32,9], index: 4, kind: input, shape index: {}]   ;;  %s2510_s5 = inlined_call_operand.vmem [shape: f32[1,32,1], index: 5, kind: input, shape index: {}]   ;;  %s2511_s6 = inlined_call_operand.vmem [shape: f32[1,4,16], index: 6, kind: input, shape index: {}]   ;;  %s2512_s7 = inlined_call_operand.vmem [shape: f32[4,1], index: 7, kind: input, shape index: {}]   ;;  %s2513_s8 = inlined_call_operand.vmem [shape: f32[2,4,256], index: 8, kind: output, shape index: {}]  }
   0x1   :  { %s1710_s29 = smov 0  }
   0x2 LB: > { %s30_s30 = sadd.s32 1, %s1636_s28  ;;  %p1520_p0 = scmp.ge.s32.totalorder %s1640_s29, 1  ;;  %s1640_s29 = sphi %s1710_s29, %s18_s29   ;;  %s1636_s28 = sphi %s1708_s28, %s2577_s28   ;;  %s1632_s27 = sphi %s1706_s27, %s2576_s27  }
   0x3   : > { %p32_p1 = scmp.ge.s32.totalorder %s30_s30, 2  ;;  %p323_p2 = scmp.lt.s32.totalorder %s1640_s29, 3 }
   0x5   : > { %s2579_s30 = smov (%p32_p1, %s30_s30), 0  ;;  %p324_p3 = pnand %p1520_p0, %p323_p2 }
   0x7   : > { %327 = sbr.rel (%p324_p3) target bundleno = 676 (0x2a4), region = 52 }
   0xc   : > { %p381_p4 = scmp.lt.s32.totalorder %s1632_s27, 1  ;;  %v1642_v0 = vmov 0.0   ;;  %v440_v1 = vld [vmem:[%s2508_s3 + $0x18] sm:$0xff]  ;;  %v1643_v2 = vmov 0   ;;  %v438_v3 = vld [vmem:[%s2508_s3 + $0x8] sm:$0xff]  ;;  %v439_v4 = vld [vmem:[%s2508_s3 + $0x10] sm:$0xff]  ;;  %v427_v31 = vlaneseq }
   0xd   : > { %575 = vmatprep.mubr.f32.mxu0 %v1642_v0  ;;  %593 = vmatprep.mubr.f32.mxu1 %v1642_v0  ;;  %v437_v5 = vld [vmem:[%s2508_s3] sm:$0xff]  ;;  %vm506_vm0 = vcmask 1043456   ;;  %vm493_vm1 = vcmask 31744   ;;  %v436_v9 = vld [vmem:[%s2507_s2 + $0x18] sm:$0xff]  ;;  %v1753_v10 = vld [vmem:[%s2509_s4 + $0x8] sm:$0xff]  ;;  %v1644_v17 = vmov 1  }
   0xe   : > { %s2581_s27 = smov (!%p381_p4, %s1632_s27), 1  ;;  %1590 = vset.pattern.permute.xlu1 %v1643_v2  ;;  %1589 = vset.pattern.permute.xlu0 %v1643_v2  ;;  %v433_v8 = vld [vmem:[%s2507_s2] sm:$0xff]  ;;  %v434_v12 = vld [vmem:[%s2507_s2 + $0x8] sm:$0xff]  ;;  %v435_v15 = vld [vmem:[%s2507_s2 + $0x10] sm:$0xff]  ;;  %v1645_v21 = vmov 2   ;;  %v1646_v23 = vmov 3  }
   0xf   : > { %488 = vperm.xlu1 %1590, %v440_v1   ;;  %s1542_s13 = sshll.u32 %s2581_s27, 3  ;;  %478 = vperm.xlu0 %1589, %v438_v3   ;;  %v419_v11 = vld [vmem:[%s2512_s7] sm:$0xf]  ;;  %v446_v14 = vld [vmem:[%s2510_s5 + $0x8] sm:$0xff]  ;;  %v1780_v16 = vld [vmem:[%s2509_s4 + $0x18] sm:$0xff]  ;;  %v1647_v24 = vmov 4  }
  0x10   : > { %s385_s18 = scalar_lea.vmem %s2505_s0, %s1542_s13  ;;  %v1767_v13 = vld [vmem:[%s2509_s4] sm:$0xff]  ;;  %v448_v19 = vld [vmem:[%s2510_s5 + $0x18] sm:$0xff]  ;;  %v1794_v20 = vld [vmem:[%s2509_s4 + $0x10] sm:$0xff]  ;;  %v1648_v25 = vmov 5   ;;  %v1649_v26 = vmov 6   ;;  %v1650_v27 = vmov 7   ;;  %s1840_s15 = scalar_lea.vmem %s2513_s8, %s1542_s13 }
  0x11   : > { %v470_v6 = vld [vmem:[%s385_s18] sm:$0xff]  ;;  %v447_v22 = vld [vmem:[%s2510_s5 + $0x10] sm:$0xff]  ;;  %v1651_v28 = vmov 8   ;;  %v1652_v29 = vmov 839922192   ;;  %v428_v35 = vshrl.u32 %v427_v31, 7 }
  0x12   : > { %v492_v7 = vcombine.high %v470_v6, %v470_v6  ;;  %v445_v18 = vld [vmem:[%s2510_s5] sm:$0xff]  ;;  %v425_v30 = vunpack.c.l.s4 %v1652_v29  ;;  %s1653_s16 = smov 17   ;;  %s1654_s17 = smov 16   ;;  %vm1291_vm10 = vcmask 130048  }
  0x13   : > { %483 = vperm.xlu1 %1590, %v439_v4   ;;  %473 = vperm.xlu0 %1589, %v437_v5   ;;  %v1879_v61 = vsub.s32 0, %v428_v35  ;;  %v1534_v62 = vld [vmem:[%s2506_s1 + $0x4] ss:$8 sm:$0x3]  ;;  %v1884_v63 = vsub.s32 1, %v428_v35  ;;  %s1655_s18 = smov 15  }
  0x14   : > { %1525 = vmatprep.subr.msk.mxu0 %vm506_vm0, %v492_v7  ;;  %1544 = vmatprep.subr.msk.mxu1 %vm506_vm0, %v492_v7  ;;  %v426_v34 = vunpack.c.0.s8 %v425_v30  ;;  %s1656_s19 = smov 1   ;;  %s1657_s20 = smov 127  }
  0x15   : > { %1526 = vmatpush1.msk.msra.mxu0 %vm506_vm0, %v470_v6  ;;  %1545 = vmatpush1.msk.msra.mxu1 %vm506_vm0, %v470_v6  ;;  %2538 = vst [vmem:[#allocation8_spill] sm:$0xff] %v1879_v61  ;;  %2539 = vst [vmem:[#allocation9_spill] sm:$0xff] %v1884_v63  ;;  %v927_v7 = vrot.slane %v1534_v62, %v1884_v63  ;;  %s1658_s21 = smov 113   ;;  %s1659_s22 = smov 112  }
  0x16   : > { %1527 = vmatmul.mubr.msk.f32.vlgmr.msra.gmra.mxu0 %vm493_vm1, %v433_v8  ;;  %1530 = vmatmul.mubr.msk.f32.vlgmr.msra.gmra.mxu1 %vm493_vm1, %v436_v9  ;;  %v429_v38 = vsub.s32 %v426_v34, %v428_v35  ;;  %s1660_s23 = smov 111  }
  0x17   : > { %581 = vmatprep.mubr.f32.mxu0 %v1642_v0  ;;  %654 = vperm.xlu1 %1590, %v1753_v10  }
  0x18   : > { %422 = vperm.xlu0 %1589, %v419_v11   ;;  %1359 = vmatprep.mubr.f32.mxu1 %v1642_v0 }
  0x1a   : > { %1528 = vmatmul.mubr.msk.f32.gmra.mxu0 %vm493_vm1, %v434_v12 }
  0x1b   : > { %587 = vmatprep.mubr.f32.mxu0 %v1642_v0  ;;  %649 = vperm.xlu1 %1590, %v1767_v13  }
  0x1c   : > { %457 = vperm.xlu0 %1589, %v446_v14  }
  0x1e   : > { %1529 = vmatmul.mubr.msk.f32.gmra.mxu0 %vm493_vm1, %v435_v15 }
  0x1f   : > { %1591 = vset.pattern.permute.xlu1 %v1644_v17 }
  0x20   : > { %734 = vperm.xlu1 %1591, %v1753_v10   ;;  %664 = vperm.xlu0 %1589, %v1780_v16  }
  0x24   : > { %1592 = vset.pattern.permute.xlu1 %v1643_v2  ;;  %452 = vperm.xlu0 %1589, %v445_v18  }
  0x25   : > { %467 = vperm.xlu1 %1592, %v448_v19  }
  0x28   : > { %659 = vperm.xlu0 %1589, %v1794_v20  }
  0x29   : > { %1593 = vset.pattern.permute.xlu1 %v1644_v17 }
  0x2a   : > { %730 = vperm.xlu1 %1593, %v1767_v13  }
  0x2c   : > { %1594 = vset.pattern.permute.xlu0 %v1644_v17 }
  0x2d   : > { %742 = vperm.xlu0 %1594, %v1780_v16  }
  0x2e   : > { %1595 = vset.pattern.permute.xlu1 %v1645_v21 }
  0x2f   : > { %812 = vperm.xlu1 %1595, %v1753_v10  }
  0x31   : > { %738 = vperm.xlu0 %1594, %v1794_v20  }
  0x33   : > { %1596 = vset.pattern.permute.xlu1 %v1643_v2  ;;  %v923_v2 = vrot.slane %v1534_v62, %v1879_v61 }
  0x34   : > { %462 = vperm.xlu1 %1596, %v447_v22  }
  0x35   : > { %1598 = vset.pattern.permute.xlu0 %v1645_v21 }
  0x36   : > { %820 = vperm.xlu0 %1598, %v1780_v16  }
  0x38   : > { %1597 = vset.pattern.permute.xlu1 %v1645_v21 }
  0x39   : > { %808 = vperm.xlu1 %1597, %v1767_v13  }
  0x3a   : > { %1601 = vset.pattern.permute.xlu0 %v1646_v23 }
  0x3b   : > { %886 = vperm.xlu0 %1601, %v1767_v13  }
  0x3d   : > { %1599 = vset.pattern.permute.xlu1 %v1646_v23 }
  0x3e   : > { %890 = vperm.xlu1 %1599, %v1753_v10  }
  0x3f   : > { %894 = vperm.xlu0 %1601, %v1794_v20  }
  0x42   : > { %1600 = vset.pattern.permute.xlu1 %v1645_v21 }
  0x43   : > { %816 = vperm.xlu1 %1600, %v1794_v20   ;;  %1604 = vset.pattern.permute.xlu0 %v1647_v24 }
  0x44   : > { %951 = vperm.xlu0 %1604, %v1780_v16  }
  0x47   : > { %1602 = vset.pattern.permute.xlu1 %v1646_v23 }
  0x48   : > { %898 = vperm.xlu1 %1602, %v1780_v16   ;;  %1607 = vset.pattern.permute.xlu0 %v1648_v25 }
  0x49   : > { %1017 = vperm.xlu0 %1607, %v1767_v13  }
  0x4c   : > { %1603 = vset.pattern.permute.xlu1 %v1647_v24 }
  0x4d   : > { %943 = vperm.xlu1 %1603, %v1753_v10   ;;  %1025 = vperm.xlu0 %1607, %v1794_v20  }
  0x51   : > { %939 = vperm.xlu1 %1603, %v1767_v13   ;;  %1610 = vset.pattern.permute.xlu0 %v1649_v26 }
  0x52   : > { %1107 = vperm.xlu0 %1610, %v1780_v16  }
  0x55   : > { %1605 = vset.pattern.permute.xlu1 %v1648_v25 }
  0x56   : > { %1021 = vperm.xlu1 %1605, %v1753_v10   ;;  %1613 = vset.pattern.permute.xlu0 %v1650_v27 }
  0x57   : > { %1173 = vperm.xlu0 %1613, %v1767_v13  }
  0x5a   : > { %1606 = vset.pattern.permute.xlu1 %v1647_v24 }
  0x5b   : > { %947 = vperm.xlu1 %1606, %v1794_v20   ;;  %1181 = vperm.xlu0 %1613, %v1794_v20  }
  0x5f   : > { %1608 = vset.pattern.permute.xlu1 %v1648_v25  ;;  %1616 = vset.pattern.permute.xlu0 %v1651_v28 }
  0x60   : > { %1029 = vperm.xlu1 %1608, %v1780_v16   ;;  %1263 = vperm.xlu0 %1616, %v1780_v16  }
  0x64   : > { %1609 = vset.pattern.permute.xlu1 %v1649_v26 }
  0x65   : > { %1099 = vperm.xlu1 %1609, %v1753_v10  }
  0x69   : > { %1095 = vperm.xlu1 %1609, %v1767_v13  }
  0x6d   : > { %1611 = vset.pattern.permute.xlu1 %v1650_v27 }
  0x6e   : > { %1177 = vperm.xlu1 %1611, %v1753_v10  }
  0x72   : > { %1612 = vset.pattern.permute.xlu1 %v1649_v26 }
  0x73   : > { %1103 = vperm.xlu1 %1612, %v1794_v20  }
  0x77   : > { %1614 = vset.pattern.permute.xlu1 %v1650_v27 }
  0x78   : > { %1185 = vperm.xlu1 %1614, %v1780_v16  }
  0x7c   : > { %1615 = vset.pattern.permute.xlu1 %v1651_v28 }
  0x7d   : > { %1255 = vperm.xlu1 %1615, %v1753_v10  }
  0x81   : > { %1251 = vperm.xlu1 %1615, %v1767_v13  }
  0x8a   : > { %v489_v32 = vpop.permute.xlu1 %488  ;;  %v479_v33 = vpop.permute.xlu0 %478 }
  0x8e   : > { %v1831_v36 = vpop.permute.xlu1 %483  ;;  %v474_v37 = vpop.permute.xlu0 %473 }
  0x92   : > { %v1833_v39 = vpop.permute.xlu1 %654 }
  0x93   : > { %v423_v40 = vpop.permute.xlu0 %422 }
  0x94   : > { %v430_v41 = vrot.slane %v423_v40, %v429_v38 }
  0x96   : > { %v1842_v42 = vpop.permute.xlu1 %649  ;;  %432 = vst [vmem:[%s1840_s15] sm:$0xff] %v430_v41 }
  0x97   : > { %v1849_v45 = vpop.permute.xlu0 %457 }
  0x9b   : > { %v1845_v43 = vpop.permute.xlu1 %734  ;;  %v1853_v47 = vpop.permute.xlu0 %664 }
  0x9f   : > { %v1857_v49 = vpop.permute.xlu0 %452 }
  0xa0   : > { %v1847_v44 = vpop.permute.xlu1 %467 }
  0xa3   : > { %v1861_v51 = vpop.permute.xlu0 %659 }
  0xa4   : > { %2534 = vst [vmem:[#allocation4_spill] sm:$0xff] %v1861_v51 }
  0xa5   : > { %v1851_v46 = vpop.permute.xlu1 %730 }
  0xa8   : > { %v1865_v53 = vpop.permute.xlu0 %742 }
  0xaa   : > { %v1855_v48 = vpop.permute.xlu1 %812 }
  0xab   : > { %2532 = vst [vmem:[#allocation2_spill] sm:$0xff] %v1855_v48 }
  0xac   : > { %v1869_v55 = vpop.permute.xlu0 %738 }
  0xad   : > { %2536 = vst [vmem:[#allocation6_spill] sm:$0xff] %v1869_v55 }
  0xaf   : > { %v1859_v50 = vpop.permute.xlu1 %462 }
  0xb0   : > { %2533 = vst [vmem:[#allocation3_spill] sm:$0xff] %v1859_v50 }
  0xb1   : > { %v1873_v57 = vpop.permute.xlu0 %820 }
  0xb4   : > { %v1863_v52 = vpop.permute.xlu1 %808 }
  0xb6   : > { %v1877_v59 = vpop.permute.xlu0 %886 }
  0xb9   : > { %v1867_v54 = vpop.permute.xlu1 %890 }
  0xba   : > { %2535 = vst [vmem:[#allocation5_spill] sm:$0xff] %v1867_v54  ;;  %v1886_v0 = vpop.permute.xlu0 %894 }
  0xbb   : > { %2540 = vst [vmem:[#allocation10_spill] sm:$0xff] %v1886_v0  ;;  %v1535_v0 = vld [vmem:[%s2506_s1 + $0x5] ss:$8 sm:$0x3] }
  0xbe   : > { %v1871_v56 = vpop.permute.xlu1 %816 }
  0xbf   : > { %2537 = vst [vmem:[#allocation7_spill] sm:$0xff] %v1871_v56  ;;  %v952_v13 = vpop.permute.xlu0 %951 }
  0xc3   : > { %v1875_v58 = vpop.permute.xlu1 %898 }
  0xc8   : > { %v944_v60 = vpop.permute.xlu1 %943 }
  0xcc   : > { %v940_v1 = vpop.permute.xlu1 %939 }
  0xd1   : > { %v1903_v15 = vpop.permute.xlu1 %1021 }
  0xd2   : > { %2541 = vst [vmem:[#allocation11_spill] sm:$0xff] %v1903_v15 }
  0xd6   : > { %v577_v3 = vpop.f32.mrf.mxu0  ;;  %v595_v4 = vpop.f32.mrf.mxu1 }
  0xd7   : > { %v1889_v5 = vadd.f32 %v577_v3, %v474_v37  ;;  %v1891_v6 = vadd.f32 %v595_v4, %v489_v32  ;;  %v948_v34 = vpop.permute.xlu1 %947 }
  0xd8   : > { %v579_v8 = vpop.f32.mrf.mxu0  ;;  %v597_v9 = vpop.f32.mrf.mxu1 }
  0xd9   : > { %v1894_v10 = vadd.f32 %v579_v8, %v474_v37  ;;  %606 = vrot.lane.b32.xlu1 %v1891_v6, %s1653_s16  ;;  %600 = vrot.lane.b32.xlu0 %v1889_v5, %s1653_s16  ;;  %v930_v11 = vmul.f32 %v923_v2, %v1889_v5  ;;  %v1901_v12 = vadd.f32 %v597_v9, %v489_v32 }
  0xda   : > { %v583_v14 = vpop.f32.mrf.mxu0  ;;  %v936_v16 = vmul.f32 %v923_v2, %v1891_v6 }
  0xdb   : > { %v931_v17 = vmul.f32 %v927_v7, %v1894_v10  ;;  %v1907_v18 = vmul.f32 %v940_v1, %v930_v11  ;;  %v584_v19 = vadd.f32 %v583_v14, %v479_v33  ;;  %v937_v21 = vmul.f32 %v927_v7, %v1901_v12 }
  0xdc   : > { %v585_v22 = vpop.f32.mrf.mxu0  ;;  %v1910_v23 = vmul.f32 %v952_v13, %v936_v16 }
  0xdd   : > { %v1912_v24 = vmul.f32 %v940_v1, %v931_v17  ;;  %v1914_v25 = vadd.f32 %v585_v22, %v479_v33  ;;  %689 = vrot.lane.b32.xlu1 %v1891_v6, %s1654_s17  ;;  %683 = vrot.lane.b32.xlu0 %v1889_v5, %s1654_s17  ;;  %v1920_v26 = vmul.f32 %v952_v13, %v937_v21  ;;  %v2007_v1 = vpop.permute.xlu0 %1017 }
  0xde   : > { %v589_v27 = vpop.f32.mrf.mxu0  ;;  %v932_v28 = vmul.f32 %v923_v2, %v584_v19 }
  0xdf   : > { %v1923_v29 = vadd.f32 %v589_v27, %v1831_v36  ;;  %v933_v30 = vmul.f32 %v927_v7, %v1914_v25 }
  0xe0   : > { %v591_v32 = vpop.f32.mrf.mxu0  ;;  %v1926_v33 = vmul.f32 %v944_v60, %v932_v28 }
  0xe1   : > { %v1929_v35 = vadd.f32 %v591_v32, %v1831_v36  ;;  %761 = vrot.lane.b32.xlu1 %v1889_v5, %s1655_s18  ;;  %767 = vrot.lane.b32.xlu0 %v1891_v6, %s1655_s18  ;;  %v934_v37 = vmul.f32 %v923_v2, %v1923_v29  ;;  %v1936_v38 = vmul.f32 %v944_v60, %v933_v30  ;;  %v1996_v36 = vpop.permute.xlu1 %1029  ;;  %v2021_v4 = vpop.permute.xlu0 %1025 }
  0xe2   : > { %2542 = vst [vmem:[#allocation12_spill] sm:$0xff] %v1926_v33  ;;  %2548 = vst [vmem:[#allocation18_spill] sm:$0xff] %v2021_v4 }
  0xe3   : > { %2543 = vst [vmem:[#allocation13_spill] sm:$0xff] %v1936_v38  ;;  %v935_v40 = vmul.f32 %v927_v7, %v1929_v35  ;;  %v1939_v41 = vmul.f32 %v948_v34, %v934_v37 }
  0xe5   : > { %2544 = vst [vmem:[#allocation14_spill] sm:$0xff] %v1939_v41  ;;  %v1941_v62 = vmul.f32 %v948_v34, %v935_v40  ;;  %845 = vrot.lane.b32.xlu1 %v1891_v6, %s1656_s19  ;;  %839 = vrot.lane.b32.xlu0 %v1889_v5, %s1656_s19  ;;  %v2001_v60 = vpop.permute.xlu1 %1099  ;;  %v2029_v8 = vpop.permute.xlu0 %1107  ;;  %v627_v34 = vld [vmem:[%s2506_s1] ss:$8 sm:$0x3] }
  0xe6   : > { %2546 = vst [vmem:[#allocation16_spill] sm:$0xff] %v2001_v60  ;;  %v1532_v40 = vld [vmem:[%s2506_s1 + $0x2] ss:$8 sm:$0x3] }
  0xe7   : > { %2545 = vst [vmem:[#allocation15_spill] sm:$0xff] %v1941_v62  ;;  %v2128_v41 = vrot.slane %v1532_v40, %v1879_v61  ;;  %v2131_v4 = vrot.slane %v1532_v40, %v1884_v63 }
  0xe9   : > { %976 = vrot.lane.b32.xlu1 %v1891_v6, %s1657_s20  ;;  %970 = vrot.lane.b32.xlu0 %v1889_v5, %s1657_s20  ;;  %v2013_v2 = vpop.permute.xlu1 %1095  ;;  %v2041_v11 = vpop.permute.xlu0 %1173 }
  0xed   : > { %1048 = vrot.lane.b32.xlu1 %v1889_v5, %s1658_s21  ;;  %1054 = vrot.lane.b32.xlu0 %v1891_v6, %s1658_s21  ;;  %v2019_v3 = vpop.permute.xlu1 %1177  ;;  %v2049_v14 = vpop.permute.xlu0 %1181 }
  0xee   : > { %2547 = vst [vmem:[#allocation17_spill] sm:$0xff] %v2019_v3  ;;  %2551 = vst [vmem:[#allocation21_spill] sm:$0xff] %v2049_v14 }
  0xf1   : > { %1132 = vrot.lane.b32.xlu1 %v1891_v6, %s1659_s22  ;;  %1126 = vrot.lane.b32.xlu0 %v1889_v5, %s1659_s22  ;;  %v2027_v7 = vpop.permute.xlu1 %1103  ;;  %v2061_v17 = vpop.permute.xlu0 %1263 }
  0xf2   : > { %2549 = vst [vmem:[#allocation19_spill] sm:$0xff] %v2027_v7  ;;  %2553 = vst [vmem:[#allocation23_spill] sm:$0xff] %v2061_v17  ;;  %v2117_v17 = vrot.slane %v627_v34, %v1884_v63 }
  0xf5   : > { %614 = vrot.lane.b32.xlu1 %v1901_v12, %s1653_s16  ;;  %608 = vrot.lane.b32.xlu0 %v1894_v10, %s1653_s16  ;;  %v2039_v9 = vpop.permute.xlu1 %1185 }
  0xf9   : > { %697 = vrot.lane.b32.xlu1 %v1901_v12, %s1654_s17  ;;  %691 = vrot.lane.b32.xlu0 %v1894_v10, %s1654_s17  ;;  %v2047_v13 = vpop.permute.xlu1 %1255 }
  0xfa   : > { %2550 = vst [vmem:[#allocation20_spill] sm:$0xff] %v2047_v13 }
  0xfd   : > { %769 = vrot.lane.b32.xlu1 %v1894_v10, %s1655_s18  ;;  %775 = vrot.lane.b32.xlu0 %v1901_v12, %s1655_s18  ;;  %v2059_v16 = vpop.permute.xlu1 %1251 }
  0xfe   : > { %2552 = vst [vmem:[#allocation22_spill] sm:$0xff] %v2059_v16 }
 0x101   : > { %853 = vrot.lane.b32.xlu1 %v1901_v12, %s1656_s19  ;;  %847 = vrot.lane.b32.xlu0 %v1894_v10, %s1656_s19 }
 0x105   : > { %984 = vrot.lane.b32.xlu1 %v1901_v12, %s1657_s20  ;;  %978 = vrot.lane.b32.xlu0 %v1894_v10, %s1657_s20 }
 0x109   : > { %1056 = vrot.lane.b32.xlu1 %v1894_v10, %s1658_s21  ;;  %1062 = vrot.lane.b32.xlu0 %v1901_v12, %s1658_s21 }
 0x10d   : > { %1140 = vrot.lane.b32.xlu1 %v1901_v12, %s1659_s22  ;;  %1134 = vrot.lane.b32.xlu0 %v1894_v10, %s1659_s22 }
 0x111   : > { %602 = vrot.lane.b32.xlu1 %v584_v19, %s1653_s16  ;;  %841 = vrot.lane.b32.xlu0 %v584_v19, %s1656_s19 }
 0x115   : > { %685 = vrot.lane.b32.xlu1 %v584_v19, %s1654_s17  ;;  %972 = vrot.lane.b32.xlu0 %v584_v19, %s1657_s20 }
 0x119   : > { %763 = vrot.lane.b32.xlu1 %v584_v19, %s1655_s18  ;;  %1128 = vrot.lane.b32.xlu0 %v584_v19, %s1659_s22 }
 0x11d   : > { %1050 = vrot.lane.b32.xlu1 %v584_v19, %s1658_s21  ;;  %610 = vrot.lane.b32.xlu0 %v1914_v25, %s1653_s16 }
 0x121   : > { %1206 = vrot.lane.b32.xlu1 %v584_v19, %s1660_s23  ;;  %693 = vrot.lane.b32.xlu0 %v1914_v25, %s1654_s17 }
 0x125   : > { %849 = vrot.lane.b32.xlu1 %v1914_v25, %s1656_s19  ;;  %771 = vrot.lane.b32.xlu0 %v1914_v25, %s1655_s18 }
 0x129   : > { %980 = vrot.lane.b32.xlu1 %v1914_v25, %s1657_s20  ;;  %1058 = vrot.lane.b32.xlu0 %v1914_v25, %s1658_s21 }
 0x12d   : > { %1136 = vrot.lane.b32.xlu1 %v1914_v25, %s1659_s22  ;;  %1214 = vrot.lane.b32.xlu0 %v1914_v25, %s1660_s23 }
 0x131   : > { %687 = vrot.lane.b32.xlu1 %v1923_v29, %s1654_s17  ;;  %604 = vrot.lane.b32.xlu0 %v1923_v29, %s1653_s16 }
 0x135   : > { %843 = vrot.lane.b32.xlu1 %v1923_v29, %s1656_s19  ;;  %765 = vrot.lane.b32.xlu0 %v1923_v29, %s1655_s18 }
 0x139   : > { %974 = vrot.lane.b32.xlu1 %v1923_v29, %s1657_s20  ;;  %1052 = vrot.lane.b32.xlu0 %v1923_v29, %s1658_s21 }
 0x13d   : > { %1130 = vrot.lane.b32.xlu1 %v1923_v29, %s1659_s22  ;;  %695 = vrot.lane.b32.xlu0 %v1929_v35, %s1654_s17 }
 0x141   : > { %612 = vrot.lane.b32.xlu1 %v1929_v35, %s1653_s16  ;;  %851 = vrot.lane.b32.xlu0 %v1929_v35, %s1656_s19 }
 0x145   : > { %773 = vrot.lane.b32.xlu1 %v1929_v35, %s1655_s18  ;;  %982 = vrot.lane.b32.xlu0 %v1929_v35, %s1657_s20 }
 0x149   : > { %1060 = vrot.lane.b32.xlu1 %v1929_v35, %s1658_s21  ;;  %1204 = vrot.lane.b32.xlu0 %v1889_v5, %s1660_s23 }
 0x14b   : > { %v607_v19 = vpop.permute.xlu1 %606  ;;  %v601_v21 = vpop.permute.xlu0 %600 }
 0x14d   : > { %1138 = vrot.lane.b32.xlu1 %v1929_v35, %s1659_s22  ;;  %1212 = vrot.lane.b32.xlu0 %v1894_v10, %s1660_s23 }
 0x14f   : > { %v690_v22 = vpop.permute.xlu1 %689  ;;  %v684_v25 = vpop.permute.xlu0 %683 }
 0x151   : > { %1210 = vrot.lane.b32.xlu1 %v1891_v6, %s1660_s23  ;;  %1259 = vperm.xlu0 %1616, %v1794_v20  }
 0x153   : > { %v2074_v27 = vpop.permute.xlu1 %761  ;;  %v2076_v28 = vpop.permute.xlu0 %767 }
 0x155   : > { %1218 = vrot.lane.b32.xlu1 %v1901_v12, %s1660_s23  ;;  %1216 = vrot.lane.b32.xlu0 %v1929_v35, %s1660_s23  ;;  %v2097_v12 = vand.u32 127, %v427_v31  ;;  %v2114_v31 = vrot.slane %v627_v34, %v1879_v61  ;;  %v1533_v34 = vld [vmem:[%s2506_s1 + $0x3] ss:$8 sm:$0x3] }
 0x156   : > { %v2153_v60 = vrot.slane %v1533_v34, %v1879_v61 }
 0x157   : > { %v2082_v5 = vpop.permute.xlu1 %845  ;;  %v2084_v10 = vpop.permute.xlu0 %839  ;;  %vm618_vm2 = vcmp.lt.s32.totalorder %v2097_v12, 17  ;;  %vm699_vm3 = vcmp.lt.s32.totalorder %v2097_v12, 16  ;;  %vm777_vm4 = vcmp.lt.s32.totalorder %v2097_v12, 15  ;;  %vm855_vm5 = vcmp.lt.s32.totalorder %v2097_v12, 1 }
 0x158   : > { %vm986_vm6 = vcmp.lt.s32.totalorder %v2097_v12, 127  ;;  %vm1064_vm7 = vcmp.lt.s32.totalorder %v2097_v12, 113  ;;  %vm1142_vm8 = vcmp.lt.s32.totalorder %v2097_v12, 112  ;;  %vm1220_vm9 = vcmp.lt.s32.totalorder %v2097_v12, 111  ;;  %v449_v12 = vld [vmem:[%s2511_s6] sm:$0xf] }
 0x159   : > { %1208 = vrot.lane.b32.xlu1 %v1923_v29, %s1660_s23  ;;  %v1531_v29 = vld [vmem:[%s2506_s1 + $0x1] ss:$8 sm:$0x3] }
 0x15a   : > { %v2122_v7 = vrot.slane %v1531_v29, %v1879_v61  ;;  %v2125_v62 = vrot.slane %v1531_v29, %v1884_v63 }
 0x15b   : > { %v2088_v6 = vpop.permute.xlu1 %976  ;;  %v2090_v20 = vpop.permute.xlu0 %970 }
 0x15f   : > { %v2092_v30 = vpop.permute.xlu1 %1048  ;;  %v2094_v32 = vpop.permute.xlu0 %1054 }
 0x163   : > { %v2102_v35 = vpop.permute.xlu1 %1132  ;;  %v2104_v37 = vpop.permute.xlu0 %1126 }
 0x167   : > { %v615_v14 = vpop.permute.xlu1 %614  ;;  %v609_v16 = vpop.permute.xlu0 %608 }
 0x168   : > { %v622_v56 = vsel %vm618_vm2, %v607_v19, %v615_v14  ;;  %v626_v29 = vsel %vm618_vm2, %v615_v14, %v607_v19  ;;  %v619_v50 = vsel %vm618_vm2, %v601_v21, %v609_v16  ;;  %v623_v40 = vsel %vm618_vm2, %v609_v16, %v601_v21 }
 0x169   : > { %v645_v51 = vmul.f32 %v2114_v31, %v626_v29  ;;  %v646_v55 = vmul.f32 %v2117_v17, %v622_v56  ;;  %v639_v13 = vmul.f32 %v2114_v31, %v623_v40  ;;  %v640_v3 = vmul.f32 %v2117_v17, %v619_v50  ;;  %v1536_v56 = vld [vmem:[%s2506_s1 + $0x6] ss:$8 sm:$0x3]  ;;  %v1537_v50 = vld [vmem:[%s2506_s1 + $0x7] ss:$8 sm:$0x3] }
 0x16a   : > { %v2156_v14 = vrot.slane %v1533_v34, %v1884_v63  ;;  %v2159_v19 = vrot.slane %v1535_v0, %v1879_v61  ;;  %v2162_v16 = vrot.slane %v1535_v0, %v1884_v63 }
 0x16b   : > { %v673_v21 = vmul.f32 %v1853_v47, %v645_v51  ;;  %v674_v29 = vmul.f32 %v1853_v47, %v646_v55  ;;  %v667_v34 = vmul.f32 %v1842_v42, %v639_v13  ;;  %v668_v40 = vmul.f32 %v1842_v42, %v640_v3  ;;  %v698_v38 = vpop.permute.xlu1 %697  ;;  %v692_v33 = vpop.permute.xlu0 %691 }
 0x16c   : > { %v703_v0 = vsel %vm699_vm3, %v690_v22, %v698_v38  ;;  %v707_v15 = vsel %vm699_vm3, %v698_v38, %v690_v22  ;;  %v700_v48 = vsel %vm699_vm3, %v684_v25, %v692_v33  ;;  %v704_v51 = vsel %vm699_vm3, %v692_v33, %v684_v25 }
 0x16d   : > { %v2183_v47 = vrot.slane %v1536_v56, %v1879_v61  ;;  %v2186_v55 = vrot.slane %v1536_v56, %v1884_v63  ;;  %v2189_v42 = vrot.slane %v1537_v50, %v1879_v61  ;;  %v2192_v3 = vrot.slane %v1537_v50, %v1884_v63 }
 0x16e   : > { %v727_v38 = vmul.f32 %v2122_v7, %v707_v15  ;;  %v728_v13 = vmul.f32 %v2125_v62, %v703_v0  ;;  %v721_v22 = vmul.f32 %v2122_v7, %v704_v51  ;;  %v722_v33 = vmul.f32 %v2125_v62, %v700_v48 }
 0x16f   : > { %v681_v25 = vadd.f32 %v673_v21, %v1847_v44  ;;  %v682_v56 = vadd.f32 %v674_v29, %v1847_v44  ;;  %v675_v61 = vadd.f32 %v667_v34, %v1857_v49  ;;  %v676_v54 = vadd.f32 %v668_v40, %v1857_v49  ;;  %v770_v50 = vpop.permute.xlu1 %769  ;;  %v776_v63 = vpop.permute.xlu0 %775 }
 0x170   : > { %v751_v15 = vmul.f32 %v1865_v53, %v727_v38  ;;  %v752_v0 = vmul.f32 %v1865_v53, %v728_v13  ;;  %v745_v51 = vmul.f32 %v1851_v46, %v721_v22  ;;  %v746_v48 = vmul.f32 %v1851_v46, %v722_v33 }
 0x171   : > { %v778_v21 = vsel %vm777_vm4, %v2074_v27, %v770_v50  ;;  %v782_v44 = vsel %vm777_vm4, %v770_v50, %v2074_v27  ;;  %v781_v49 = vsel %vm777_vm4, %v2076_v28, %v776_v63  ;;  %v785_v53 = vsel %vm777_vm4, %v776_v63, %v2076_v28 }
 0x172   : > { %v759_v29 = vadd.f32 %v751_v15, %v681_v25  ;;  %v760_v34 = vadd.f32 %v752_v0, %v682_v56  ;;  %v753_v40 = vadd.f32 %v745_v51, %v675_v61  ;;  %v754_v46 = vadd.f32 %v746_v48, %v676_v54 }
 0x173   : > { %v799_v38 = vmul.f32 %v2128_v41, %v782_v44  ;;  %v800_v13 = vmul.f32 %v2131_v4, %v778_v21  ;;  %v805_v22 = vmul.f32 %v2128_v41, %v785_v53  ;;  %v806_v27 = vmul.f32 %v2131_v4, %v781_v49  ;;  %v854_v33 = vpop.permute.xlu1 %853  ;;  %v848_v50 = vpop.permute.xlu0 %847 }
 0x174   : > { %v859_v63 = vsel %vm855_vm5, %v2082_v5, %v854_v33  ;;  %v863_v54 = vsel %vm855_vm5, %v854_v33, %v2082_v5  ;;  %v856_v61 = vsel %vm855_vm5, %v2084_v10, %v848_v50  ;;  %v860_v28 = vsel %vm855_vm5, %v848_v50, %v2084_v10 }
 0x175   : > { %v823_v25 = vmul.f32 %v1863_v52, %v799_v38  ;;  %v824_v56 = vmul.f32 %v1863_v52, %v800_v13  ;;  %v829_v15 = vmul.f32 %v1873_v57, %v805_v22  ;;  %v830_v0 = vmul.f32 %v1873_v57, %v806_v27 }
 0x176   : > { %v883_v51 = vmul.f32 %v2153_v60, %v863_v54  ;;  %v884_v5 = vmul.f32 %v2156_v14, %v859_v63  ;;  %v877_v48 = vmul.f32 %v2153_v60, %v860_v28  ;;  %v878_v21 = vmul.f32 %v2156_v14, %v856_v61 }
 0x177   : > { %v831_v44 = vadd.f32 %v823_v25, %v753_v40  ;;  %v832_v10 = vadd.f32 %v824_v56, %v754_v46  ;;  %v837_v49 = vadd.f32 %v829_v15, %v759_v29  ;;  %v838_v53 = vadd.f32 %v830_v0, %v760_v34  ;;  %v985_v38 = vpop.permute.xlu1 %984  ;;  %v979_v52 = vpop.permute.xlu0 %978 }
 0x178   : > { %v907_v13 = vmul.f32 %v1875_v58, %v883_v51  ;;  %v908_v57 = vmul.f32 %v1875_v58, %v884_v5  ;;  %v901_v22 = vmul.f32 %v1877_v59, %v877_v48  ;;  %v902_v27 = vmul.f32 %v1877_v59, %v878_v21 }
 0x179   : > { %v990_v33 = vsel %vm986_vm6, %v2088_v6, %v985_v38  ;;  %v994_v40 = vsel %vm986_vm6, %v985_v38, %v2088_v6  ;;  %v987_v29 = vsel %vm986_vm6, %v2090_v20, %v979_v52  ;;  %v991_v58 = vsel %vm986_vm6, %v979_v52, %v2090_v20 }
 0x17a   : > { %v915_v34 = vadd.f32 %v907_v13, %v837_v49  ;;  %v916_v46 = vadd.f32 %v908_v57, %v838_v53  ;;  %v909_v50 = vadd.f32 %v901_v22, %v831_v44  ;;  %v910_v59 = vadd.f32 %v902_v27, %v832_v10 }
 0x17b   : > { %v1014_v63 = vmul.f32 %v2159_v19, %v990_v33  ;;  %v1015_v54 = vmul.f32 %v2162_v16, %v994_v40  ;;  %v1008_v61 = vmul.f32 %v2159_v19, %v987_v29  ;;  %v1009_v6 = vmul.f32 %v2162_v16, %v991_v58  ;;  %v1057_v28 = vpop.permute.xlu1 %1056  ;;  %v1063_v25 = vpop.permute.xlu0 %1062 }
 0x17c   : > { %v968_v56 = vadd.f32 %v1910_v23, %v915_v34  ;;  %v969_v15 = vadd.f32 %v1920_v26, %v916_v46  ;;  %v963_v20 = vadd.f32 %v1912_v24, %v910_v59  ;;  %v962_v0 = vadd.f32 %v1907_v18, %v909_v50 }
 0x17d   : > { %v1038_v51 = vmul.f32 %v1996_v36, %v1014_v63  ;;  %v1039_v5 = vmul.f32 %v1996_v36, %v1015_v54  ;;  %v1032_v48 = vmul.f32 %v2007_v1, %v1008_v61  ;;  %v1033_v21 = vmul.f32 %v2007_v1, %v1009_v6 }
 0x17e   : > { %v1065_v44 = vsel %vm1064_vm7, %v2092_v30, %v1057_v28  ;;  %v1069_v23 = vsel %vm1064_vm7, %v1057_v28, %v2092_v30  ;;  %v1068_v18 = vsel %vm1064_vm7, %v2094_v32, %v1063_v25  ;;  %v1072_v24 = vsel %vm1064_vm7, %v1063_v25, %v2094_v32 }
 0x17f   : > { %v1046_v26 = vadd.f32 %v1038_v51, %v968_v56  ;;  %v1047_v36 = vadd.f32 %v1039_v5, %v969_v15  ;;  %v1040_v10 = vadd.f32 %v1032_v48, %v962_v0  ;;  %v1041_v1 = vadd.f32 %v1033_v21, %v963_v20  ;;  %v1141_v49 = vpop.permute.xlu1 %1140  ;;  %v1135_v53 = vpop.permute.xlu0 %1134 }
 0x180   : > { %v1086_v38 = vmul.f32 %v2183_v47, %v1065_v44  ;;  %v1087_v52 = vmul.f32 %v2186_v55, %v1069_v23  ;;  %v1092_v30 = vmul.f32 %v2183_v47, %v1068_v18  ;;  %v1093_v13 = vmul.f32 %v2186_v55, %v1072_v24 }
 0x181   : > { %v1146_v57 = vsel %vm1142_vm8, %v2102_v35, %v1141_v49  ;;  %v1150_v32 = vsel %vm1142_vm8, %v1141_v49, %v2102_v35  ;;  %v1143_v22 = vsel %vm1142_vm8, %v2104_v37, %v1135_v53  ;;  %v1147_v27 = vsel %vm1142_vm8, %v1135_v53, %v2104_v37 }
 0x182   : > { %v1110_v33 = vmul.f32 %v2013_v2, %v1086_v38  ;;  %v1111_v40 = vmul.f32 %v2013_v2, %v1087_v52  ;;  %v1116_v29 = vmul.f32 %v2029_v8, %v1092_v30  ;;  %v1117_v58 = vmul.f32 %v2029_v8, %v1093_v13 }
 0x183   : > { %v1170_v34 = vmul.f32 %v2189_v42, %v1146_v57  ;;  %v1171_v35 = vmul.f32 %v2192_v3, %v1150_v32  ;;  %v1164_v46 = vmul.f32 %v2189_v42, %v1143_v22  ;;  %v1165_v50 = vmul.f32 %v2192_v3, %v1147_v27  ;;  %v603_v59 = vpop.permute.xlu1 %602  ;;  %v842_v63 = vpop.permute.xlu0 %841 }
 0x184   : > { %v1118_v54 = vadd.f32 %v1110_v33, %v1040_v10  ;;  %v1119_v37 = vadd.f32 %v1111_v40, %v1041_v1  ;;  %v1124_v61 = vadd.f32 %v1116_v29, %v1046_v26  ;;  %v1125_v6 = vadd.f32 %v1117_v58, %v1047_v36 }
 0x185   : > { %v1194_v2 = vmul.f32 %v2039_v9, %v1170_v34  ;;  %v1195_v28 = vmul.f32 %v2039_v9, %v1171_v35  ;;  %v1188_v8 = vmul.f32 %v2041_v11, %v1164_v46  ;;  %v1189_v25 = vmul.f32 %v2041_v11, %v1165_v50  ;;  %v2554_v50 = vld [vmem:[#allocation5_spill] sm:$0xff] }
 0x187   : > { %v2313_v56 = vadd.f32 %v1194_v2, %v1124_v61  ;;  %v2315_v15 = vadd.f32 %v1195_v28, %v1125_v6  ;;  %v2317_v20 = vadd.f32 %v1188_v8, %v1118_v54  ;;  %v2319_v0 = vadd.f32 %v1189_v25, %v1119_v37  ;;  %v686_v51 = vpop.permute.xlu1 %685  ;;  %v973_v5 = vpop.permute.xlu0 %972  ;;  %v2555_v61 = vld [vmem:[#allocation2_spill] sm:$0xff]  ;;  %v1538_v25 = vld [vmem:[%s2506_s1 + $0x10] ss:$8 sm:$0x3] }
 0x18b   : > { %v764_v48 = vpop.permute.xlu1 %763  ;;  %v1129_v21 = vpop.permute.xlu0 %1128 }
 0x18f   : > { %v1051_v44 = vpop.permute.xlu1 %1050  ;;  %v611_v23 = vpop.permute.xlu0 %610 }
 0x190   : > { %v620_v9 = vsel %vm618_vm2, %v603_v59, %v611_v23  ;;  %v624_v11 = vsel %vm618_vm2, %v611_v23, %v603_v59 }
 0x191   : > { %v641_v18 = vmul.f32 %v2114_v31, %v624_v11  ;;  %v642_v24 = vmul.f32 %v2117_v17, %v620_v9 }
 0x193   : > { %v669_v26 = vmul.f32 %v1833_v39, %v641_v18  ;;  %v670_v36 = vmul.f32 %v1833_v39, %v642_v24  ;;  %v1207_v10 = vpop.permute.xlu1 %1206  ;;  %v694_v1 = vpop.permute.xlu0 %693 }
 0x194   : > { %v701_v49 = vsel %vm699_vm3, %v686_v51, %v694_v1  ;;  %v705_v53 = vsel %vm699_vm3, %v694_v1, %v686_v51 }
 0x195   : > { %v723_v38 = vmul.f32 %v2122_v7, %v705_v53  ;;  %v724_v52 = vmul.f32 %v2125_v62, %v701_v49  ;;  %v677_v30 = vadd.f32 %v669_v26, %v1849_v45  ;;  %v678_v13 = vadd.f32 %v670_v36, %v1849_v45  ;;  %v2556_v36 = vld [vmem:[#allocation8_spill] sm:$0xff]  ;;  %v2557_v49 = vld [vmem:[#allocation9_spill] sm:$0xff] }
 0x196   : > { %v2372_v1 = vrot.slane %v1538_v25, %v2556_v36  ;;  %v2375_v53 = vrot.slane %v1538_v25, %v2557_v49 }
 0x197   : > { %v747_v57 = vmul.f32 %v1845_v43, %v723_v38  ;;  %v748_v39 = vmul.f32 %v1845_v43, %v724_v52  ;;  %v850_v32 = vpop.permute.xlu1 %849  ;;  %v772_v22 = vpop.permute.xlu0 %771 }
 0x198   : > { %v857_v27 = vsel %vm855_vm5, %v842_v63, %v850_v32  ;;  %v861_v33 = vsel %vm855_vm5, %v850_v32, %v842_v63  ;;  %v779_v40 = vsel %vm777_vm4, %v764_v48, %v772_v22  ;;  %v783_v29 = vsel %vm777_vm4, %v772_v22, %v764_v48 }
 0x199   : > { %v755_v58 = vadd.f32 %v747_v57, %v677_v30  ;;  %v756_v45 = vadd.f32 %v748_v39, %v678_v13  ;;  %v879_v34 = vmul.f32 %v2153_v60, %v861_v33  ;;  %v880_v43 = vmul.f32 %v2156_v14, %v857_v27  ;;  %v2558_v13 = vld [vmem:[#allocation11_spill] sm:$0xff]  ;;  %v2559_v33 = vld [vmem:[#allocation12_spill] sm:$0xff] }
 0x19a   : > { %v801_v35 = vmul.f32 %v2128_v41, %v783_v29  ;;  %v802_v46 = vmul.f32 %v2131_v4, %v779_v40  ;;  %v2560_v29 = vld [vmem:[#allocation13_spill] sm:$0xff] }
 0x19b   : > { %v903_v59 = vmul.f32 %v2554_v50, %v879_v34  ;;  %v904_v63 = vmul.f32 %v2554_v50, %v880_v43  ;;  %v981_v54 = vpop.permute.xlu1 %980  ;;  %v1059_v37 = vpop.permute.xlu0 %1058 }
 0x19c   : > { %v825_v6 = vmul.f32 %v2555_v61, %v801_v35  ;;  %v826_v2 = vmul.f32 %v2555_v61, %v802_v46  ;;  %v988_v28 = vsel %vm986_vm6, %v973_v5, %v981_v54  ;;  %v992_v8 = vsel %vm986_vm6, %v981_v54, %v973_v5 }
 0x19d   : > { %v1010_v51 = vmul.f32 %v2159_v19, %v988_v28  ;;  %v1011_v48 = vmul.f32 %v2162_v16, %v992_v8  ;;  %v1066_v23 = vsel %vm1064_vm7, %v1051_v44, %v1059_v37  ;;  %v1070_v9 = vsel %vm1064_vm7, %v1059_v37, %v1051_v44 }
 0x19e   : > { %v833_v11 = vadd.f32 %v825_v6, %v755_v58  ;;  %v834_v18 = vadd.f32 %v826_v2, %v756_v45  ;;  %v1088_v24 = vmul.f32 %v2183_v47, %v1066_v23  ;;  %v1089_v5 = vmul.f32 %v2186_v55, %v1070_v9  ;;  %v2562_v6 = vld [vmem:[#allocation17_spill] sm:$0xff]  ;;  %v2563_v23 = vld [vmem:[#allocation20_spill] sm:$0xff] }
 0x19f   : > { %v1137_v26 = vpop.permute.xlu1 %1136  ;;  %v1215_v38 = vpop.permute.xlu0 %1214  ;;  %v1034_v57 = vmul.f32 %v2558_v13, %v1010_v51  ;;  %v1035_v44 = vmul.f32 %v2558_v13, %v1011_v48 }
 0x1a0   : > { %v911_v52 = vadd.f32 %v903_v59, %v833_v11  ;;  %v912_v30 = vadd.f32 %v904_v63, %v834_v18  ;;  %v1144_v39 = vsel %vm1142_vm8, %v1129_v21, %v1137_v26  ;;  %v1148_v32 = vsel %vm1142_vm8, %v1137_v26, %v1129_v21  ;;  %v2561_v63 = vld [vmem:[#allocation16_spill] sm:$0xff] }
 0x1a1   : > { %v1222_v22 = vsel %vm1220_vm9, %v1207_v10, %v1215_v38  ;;  %v1226_v27 = vsel %vm1220_vm9, %v1215_v38, %v1207_v10  ;;  %v1166_v45 = vmul.f32 %v2189_v42, %v1144_v39  ;;  %v1167_v34 = vmul.f32 %v2192_v3, %v1148_v32 }
 0x1a2   : > { %v964_v40 = vadd.f32 %v2559_v33, %v911_v52  ;;  %v965_v58 = vadd.f32 %v2560_v29, %v912_v30  ;;  %v1244_v43 = vmul.f32 %v2372_v1, %v1222_v22  ;;  %v1245_v35 = vmul.f32 %v2375_v53, %v1226_v27  ;;  %v2564_v29 = vld [vmem:[#allocation6_spill] sm:$0xff] }
 0x1a3   : > { %v688_v46 = vpop.permute.xlu1 %687  ;;  %v605_v21 = vpop.permute.xlu0 %604  ;;  %v1112_v54 = vmul.f32 %v2561_v63, %v1088_v24  ;;  %v1113_v10 = vmul.f32 %v2561_v63, %v1089_v5  ;;  %v1190_v2 = vmul.f32 %v2562_v6, %v1166_v45  ;;  %v1191_v28 = vmul.f32 %v2562_v6, %v1167_v34  ;;  %v2565_v34 = vld [vmem:[#allocation4_spill] sm:$0xff] }
 0x1a4   : > { %v1042_v50 = vadd.f32 %v1034_v57, %v964_v40  ;;  %v1043_v59 = vadd.f32 %v1035_v44, %v965_v58  ;;  %v1268_v9 = vmul.f32 %v2563_v23, %v1244_v43  ;;  %v1269_v11 = vmul.f32 %v2563_v23, %v1245_v35  ;;  %v2568_v23 = vld [vmem:[#allocation10_spill] sm:$0xff] }
 0x1a6   : > { %v1120_v37 = vadd.f32 %v1112_v54, %v1042_v50  ;;  %v1121_v61 = vadd.f32 %v1113_v10, %v1043_v59 }
 0x1a7   : > { %v844_v8 = vpop.permute.xlu1 %843  ;;  %v766_v25 = vpop.permute.xlu0 %765 }
 0x1a8   : > { %v1198_v51 = vadd.f32 %v1190_v2, %v1120_v37  ;;  %v1199_v48 = vadd.f32 %v1191_v28, %v1121_v61  ;;  %v2567_v28 = vld [vmem:[#allocation7_spill] sm:$0xff] }
 0x1aa   : > { %v2399_v18 = vadd.f32 %v1268_v9, %v1198_v51  ;;  %v2401_v26 = vadd.f32 %v1269_v11, %v1199_v48 }
 0x1ab   : > { %v975_v24 = vpop.permute.xlu1 %974  ;;  %v1053_v5 = vpop.permute.xlu0 %1052 }
 0x1af   : > { %v1131_v36 = vpop.permute.xlu1 %1130  ;;  %v696_v49 = vpop.permute.xlu0 %695 }
 0x1b0   : > { %v702_v38 = vsel %vm699_vm3, %v688_v46, %v696_v49  ;;  %v706_v52 = vsel %vm699_vm3, %v696_v49, %v688_v46 }
 0x1b1   : > { %v725_v30 = vmul.f32 %v2122_v7, %v706_v52  ;;  %v726_v13 = vmul.f32 %v2125_v62, %v702_v38 }
 0x1b3   : > { %v613_v57 = vpop.permute.xlu1 %612  ;;  %v852_v44 = vpop.permute.xlu0 %851  ;;  %v749_v58 = vmul.f32 %v2564_v29, %v725_v30  ;;  %v750_v45 = vmul.f32 %v2564_v29, %v726_v13  ;;  %v2569_v30 = vld [vmem:[#allocation18_spill] sm:$0xff] }
 0x1b4   : > { %v621_v39 = vsel %vm618_vm2, %v605_v21, %v613_v57  ;;  %v625_v32 = vsel %vm618_vm2, %v613_v57, %v605_v21  ;;  %v858_v22 = vsel %vm855_vm5, %v844_v8, %v852_v44  ;;  %v862_v27 = vsel %vm855_vm5, %v852_v44, %v844_v8 }
 0x1b5   : > { %v643_v33 = vmul.f32 %v2114_v31, %v625_v32  ;;  %v644_v7 = vmul.f32 %v2117_v17, %v621_v39  ;;  %v881_v62 = vmul.f32 %v2153_v60, %v862_v27  ;;  %v882_v40 = vmul.f32 %v2156_v14, %v858_v22  ;;  %v2566_v14 = vld [vmem:[#allocation3_spill] sm:$0xff] }
 0x1b7   : > { %v671_v43 = vmul.f32 %v2565_v34, %v643_v33  ;;  %v672_v35 = vmul.f32 %v2565_v34, %v644_v7  ;;  %v774_v46 = vpop.permute.xlu1 %773  ;;  %v983_v21 = vpop.permute.xlu0 %982  ;;  %v905_v9 = vmul.f32 %v2568_v23, %v881_v62  ;;  %v906_v11 = vmul.f32 %v2568_v23, %v882_v40  ;;  %v2571_v33 = vld [vmem:[#allocation15_spill] sm:$0xff] }
 0x1b8   : > { %v780_v50 = vsel %vm777_vm4, %v766_v25, %v774_v46  ;;  %v784_v17 = vsel %vm777_vm4, %v774_v46, %v766_v25  ;;  %v989_v60 = vsel %vm986_vm6, %v975_v24, %v983_v21  ;;  %v993_v31 = vsel %vm986_vm6, %v983_v21, %v975_v24  ;;  %v2572_v34 = vld [vmem:[#allocation19_spill] sm:$0xff]  ;;  %v2573_v21 = vld [vmem:[#allocation22_spill] sm:$0xff] }
 0x1b9   : > { %v679_v59 = vadd.f32 %v671_v43, %v2566_v14  ;;  %v680_v63 = vadd.f32 %v672_v35, %v2566_v14  ;;  %v803_v54 = vmul.f32 %v2128_v41, %v784_v17  ;;  %v804_v10 = vmul.f32 %v2131_v4, %v780_v50 }
 0x1ba   : > { %v1012_v37 = vmul.f32 %v2159_v19, %v989_v60  ;;  %v1013_v61 = vmul.f32 %v2162_v16, %v993_v31 }
 0x1bb   : > { %v757_v6 = vadd.f32 %v749_v58, %v679_v59  ;;  %v758_v2 = vadd.f32 %v750_v45, %v680_v63  ;;  %v827_v8 = vmul.f32 %v2567_v28, %v803_v54  ;;  %v828_v25 = vmul.f32 %v2567_v28, %v804_v10  ;;  %v1061_v51 = vpop.permute.xlu1 %1060  ;;  %v1205_v48 = vpop.permute.xlu0 %1204 }
 0x1bc   : > { %v1067_v41 = vsel %vm1064_vm7, %v1053_v5, %v1061_v51  ;;  %v1071_v4 = vsel %vm1064_vm7, %v1061_v51, %v1053_v5  ;;  %v1036_v13 = vmul.f32 %v2569_v30, %v1012_v37  ;;  %v1037_v57 = vmul.f32 %v2569_v30, %v1013_v61 }
 0x1bd   : > { %v835_v19 = vadd.f32 %v827_v8, %v757_v6  ;;  %v836_v16 = vadd.f32 %v828_v25, %v758_v2  ;;  %v1090_v24 = vmul.f32 %v2183_v47, %v1067_v41  ;;  %v1091_v49 = vmul.f32 %v2186_v55, %v1071_v4  ;;  %v2570_v55 = vld [vmem:[#allocation14_spill] sm:$0xff]  ;;  %v2575_v8 = vld [vmem:[#allocation23_spill] sm:$0xff] }
 0x1bf   : > { %v913_v38 = vadd.f32 %v905_v9, %v835_v19  ;;  %v914_v52 = vadd.f32 %v906_v11, %v836_v16  ;;  %v1139_v44 = vpop.permute.xlu1 %1138  ;;  %v1213_v39 = vpop.permute.xlu0 %1212  ;;  %v1114_v43 = vmul.f32 %v2572_v34, %v1090_v24  ;;  %v1115_v35 = vmul.f32 %v2572_v34, %v1091_v49 }
 0x1c0   : > { %v1145_v32 = vsel %vm1142_vm8, %v1131_v36, %v1139_v44  ;;  %v1149_v5 = vsel %vm1142_vm8, %v1139_v44, %v1131_v36  ;;  %v1221_v22 = vsel %vm1220_vm9, %v1205_v48, %v1213_v39  ;;  %v1225_v47 = vsel %vm1220_vm9, %v1213_v39, %v1205_v48  ;;  %v1290_v39 = vld [vmem:[%s1840_s15] sm:$0xff] }
 0x1c1   : > { %v966_v27 = vadd.f32 %v2570_v55, %v913_v38  ;;  %v967_v7 = vadd.f32 %v2571_v33, %v914_v52  ;;  %v1168_v62 = vmul.f32 %v2189_v42, %v1145_v32  ;;  %v1169_v40 = vmul.f32 %v2192_v3, %v1149_v5  ;;  %v2574_v42 = vld [vmem:[#allocation21_spill] sm:$0xff] }
 0x1c2   : > { %v1242_v29 = vmul.f32 %v2372_v1, %v1221_v22  ;;  %v1243_v58 = vmul.f32 %v2375_v53, %v1225_v47  ;;  %v1285_v9 = vmax.f32 %v2401_v26, 0.0 }
 0x1c3   : > { %v1044_v45 = vadd.f32 %v1036_v13, %v966_v27  ;;  %v1045_v36 = vadd.f32 %v1037_v57, %v967_v7  ;;  %v1211_v46 = vpop.permute.xlu1 %1210  ;;  %v1192_v14 = vmul.f32 %v2574_v42, %v1168_v62  ;;  %v1193_v3 = vmul.f32 %v2574_v42, %v1169_v40 }
 0x1c4   : > { %v1266_v50 = vmul.f32 %v2573_v21, %v1242_v29  ;;  %v1267_v17 = vmul.f32 %v2573_v21, %v1243_v58 }
 0x1c5   : > { %v1122_v60 = vadd.f32 %v1114_v43, %v1044_v45  ;;  %v1123_v31 = vadd.f32 %v1115_v35, %v1045_v36 }
 0x1c6   : > { %v1274_v59 = vadd.f32 %v1266_v50, %v2317_v20  ;;  %v1275_v63 = vadd.f32 %v1267_v17, %v2319_v0  ;;  %v1284_v0 = vmax.f32 %v2399_v18, 0.0 }
 0x1c7   : > { %v1200_v54 = vadd.f32 %v1192_v14, %v1122_v60  ;;  %v1201_v10 = vadd.f32 %v1193_v3, %v1123_v31  ;;  %v1219_v37 = vpop.permute.xlu1 %1218 }
 0x1c8   : > { %v1224_v61 = vsel %vm1220_vm9, %v1211_v46, %v1219_v37  ;;  %v1228_v6 = vsel %vm1220_vm9, %v1219_v37, %v1211_v46  ;;  %v1282_v26 = vmax.f32 %v1274_v59, 0.0  ;;  %v1283_v30 = vmax.f32 %v1275_v63, 0.0 }
 0x1c9   : > { %v1248_v2 = vmul.f32 %v2372_v1, %v1224_v61  ;;  %v1249_v28 = vmul.f32 %v2375_v53, %v1228_v6 }
 0x1cb   : > { %v1272_v25 = vmul.f32 %v2575_v8, %v1248_v2  ;;  %v1273_v51 = vmul.f32 %v2575_v8, %v1249_v28  ;;  %v1209_v4 = vpop.permute.xlu1 %1208 }
 0x1cc   : > { %v1260_v20 = vpop.permute.xlu0 %1259 }
 0x1cd   : > { %v1280_v48 = vadd.f32 %v1272_v25, %v2313_v56  ;;  %v1281_v23 = vadd.f32 %v1273_v51, %v2315_v15 }
 0x1cf   : > { %v1289_v11 = vmul.f32 %v1285_v9, %v1281_v23  ;;  %v1288_v41 = vmul.f32 %v1284_v0, %v1280_v48 }
 0x1d0   : > { %v1217_v19 = vpop.permute.xlu0 %1216 }
 0x1d1   : > { %v1223_v16 = vsel %vm1220_vm9, %v1209_v4, %v1217_v19  ;;  %v1227_v24 = vsel %vm1220_vm9, %v1217_v19, %v1209_v4  ;;  %1323 = vmatprep.subr.mxu1 %v1289_v11 }
 0x1d2   : > { %v1246_v49 = vmul.f32 %v2372_v1, %v1223_v16  ;;  %v1247_v18 = vmul.f32 %v2375_v53, %v1227_v24  ;;  %1324 = vmatpush1.msra.mxu1 %v1288_v41 }
 0x1d4   : > { %v1270_v56 = vmul.f32 %v1260_v20, %v1246_v49  ;;  %v1271_v15 = vmul.f32 %v1260_v20, %v1247_v18 }
 0x1d6   : > { %v1278_v38 = vadd.f32 %v1270_v56, %v1200_v54  ;;  %v1279_v52 = vadd.f32 %v1271_v15, %v1201_v10 }
 0x1d8   : > { %v1287_v13 = vmul.f32 %v1283_v30, %v1279_v52  ;;  %v1286_v57 = vmul.f32 %v1282_v26, %v1278_v38 }
 0x1da   : > { %1325 = vmatprep.subr.mxu1 %v1287_v13 }
 0x1db   : > { %1326 = vmatpush1.msra.mxu1 %v1286_v57 }
 0x1dc   : > { %1539 = vmatmul.mubr.msk.f32.vlgmr.msra.gmra.mxu1 %vm1291_vm10, %v449_v12 }
 0x29c   : > { %v1361_v1 = vpop.f32.mrf.mxu1 }
 0x29e   : > { %v1363_v53 = vpop.f32.mrf.mxu1 }
 0x29f   : > { %v1368_v44 = vcombine.low %v1361_v1, %v1363_v53 }
 0x2a1   : > { %v1370_v32 = vadd.f32 %v1368_v44, %v1290_v39 }
 0x2a3   : > { %1371 = vst [vmem:[%s1840_s15] sm:$0xff] %v1370_v32 }
 0x2a4 PF: > { %s18_s29 = sadd.s32 1, %s1640_s29   ;;  %s2576_s27 = smov %s1636_s28 }
 0x2a5   : > { %p15_p5 = scmp.ge.s32.totalorder %s18_s29, 4   ;;  %s2577_s28 = smov %s2579_s30 }
 0x2a7   :  { %17 = sbr.rel (!%p15_p5) target bundleno = 2 (0x2), region = 109 }

</bundles_post_ra>
